<compile_context>
chip_gen: v7x
topology: tpu7x:2x2x1
jax: 0.10.0
libtpu: 0.0.40
codegen_flags: <defaults>
</compile_context>

<pallas_src>
import functools

import jax
import jax.numpy as jnp
from jax.experimental import pallas as pl
from jax.experimental.pallas import tpu as pltpu

BN_EPS = 1e-5
LANE = 128
VMEM_LIMIT_BYTES = 48 * 1024 * 1024       # explicit: covers v5e/v6e/v7x scoped defaults
X_RESIDENT_BYTES = 8 * 1024 * 1024        # keep X whole in VMEM when <= 8 MiB


def _round_up(x, m):
    return (x + m - 1) // m * m


def _choose_tiles(num_nodes):
    """Pick (n_pad, tile). Target 1024 tiles; pad N up to the tile multiple."""
    n0 = _round_up(max(num_nodes, 256), 256)
    if n0 <= 1024:
        return n0, n0                      # whole problem in one (or few) tiles
    tile = 1024                            # v5e-safe; v7x could go 2048 with more VMEM
    return _round_up(n0, tile), tile


def _vmem_spec():
    return pl.BlockSpec(memory_space=pltpu.MemorySpace.VMEM)


# ----------------------------- Pallas kernels ------------------------------ #

def _gcn_layer_kernel(*refs, norm_x, n_valid, tile_rows, x_resident):
    """Intermediate GCNConv, tiled over (row, k):
         x_in  = relu(x*scale + shift)            (fused BN-apply of the PREVIOUS layer)
         h     = (A_hat @ x_in) @ W + b           (f32 accumulate, bf16 MXU epilogue)
       outputs: h (bf16) and masked per-row-tile partial (sum, sumsq) feature stats."""
    if norm_x:
        a_ref, x_ref, scale_ref, shift_ref, w_ref, b_ref, h_ref, stats_ref, acc_ref = refs
    else:
        a_ref, x_ref, w_ref, b_ref, h_ref, stats_ref, acc_ref = refs
        scale_ref = shift_ref = None

    i = pl.program_id(0)
    k = pl.program_id(1)
    tk = a_ref.shape[1]

    @pl.when(k == 0)
    def _init():
        acc_ref[...] = jnp.zeros_like(acc_ref)

    if x_resident:
        start = pl.multiple_of(k * tk, 256)
        x = x_ref[pl.ds(start, tk), :]
    else:
        x = x_ref[...]
    if norm_x:
        x = jnp.maximum(x.astype(jnp.float32) * scale_ref[...] + shift_ref[...],
                        0.0).astype(jnp.bfloat16)

    # bf16 x bf16 -> f32 accumulate on the MXU.
    acc_ref[...] += jnp.dot(a_ref[...], x, preferred_element_type=jnp.float32)

    @pl.when(k == pl.num_programs(1) - 1)
    def _finalize():
        h = jnp.dot(acc_ref[...].astype(jnp.bfloat16), w_ref[...],
                    preferred_element_type=jnp.float32) + b_ref[...]
        h_ref[...] = h.astype(h_ref.dtype)
        # Masked partial BN statistics over the REAL rows of this tile.
        rows = jax.lax.broadcasted_iota(jnp.int32, h.shape, 0) + i * tile_rows
        hm = jnp.where(rows < n_valid, h, 0.0)
        s = jnp.sum(hm, axis=0, keepdims=True)
        q = jnp.sum(hm * hm, axis=0, keepdims=True)
        stats_ref[...] = jnp.concatenate([s, q], axis=0)[None]


def _gcn_pool_kernel(*refs, norm_x, x_resident):
    """Last GCNConv fused with scatter-sum pooling; emits a PARTIAL pool per row tile
       (row axis stays 'parallel' -> v7x megacore), summed outside."""
    if norm_x:
        a_ref, x_ref, scale_ref, shift_ref, seg_ref, w_ref, b_ref, pool_ref, acc_ref = refs
    else:
        a_ref, x_ref, seg_ref, w_ref, b_ref, pool_ref, acc_ref = refs
        scale_ref = shift_ref = None

    k = pl.program_id(1)
    tk = a_ref.shape[1]

    @pl.when(k == 0)
    def _init():
        acc_ref[...] = jnp.zeros_like(acc_ref)

    if x_resident:
        start = pl.multiple_of(k * tk, 256)
        x = x_ref[pl.ds(start, tk), :]
    else:
        x = x_ref[...]
    if norm_x:
        x = jnp.maximum(x.astype(jnp.float32) * scale_ref[...] + shift_ref[...],
                        0.0).astype(jnp.bfloat16)

    acc_ref[...] += jnp.dot(a_ref[...], x, preferred_element_type=jnp.float32)

    @pl.when(k == pl.num_programs(1) - 1)
    def _finalize():
        h = jnp.dot(acc_ref[...].astype(jnp.bfloat16), w_ref[...],
                    preferred_element_type=jnp.float32) + b_ref[...]
        pool_ref[...] = jnp.dot(seg_ref[...], h.astype(jnp.bfloat16),
                                preferred_element_type=jnp.float32)[None]


def _mlp_head_kernel(*refs, num_hidden, clip):
    """Fused MLP head: (Linear -> BN -> ReLU) * num_hidden -> Linear [-> clip]."""
    z_ref, o_ref = refs[0], refs[-1]
    h = z_ref[...].astype(jnp.float32)
    idx = 1
    for _ in range(num_hidden):
        w, b, g, bt = refs[idx], refs[idx + 1], refs[idx + 2], refs[idx + 3]
        idx += 4
        h = jnp.dot(h, w[...], preferred_element_type=jnp.float32) + b[...]
        mean = jnp.mean(h, axis=0, keepdims=True)
        var = jnp.mean((h - mean) ** 2, axis=0, keepdims=True)
        h = (h - mean) * jax.lax.rsqrt(var + BN_EPS) * g[...] + bt[...]
        h = jnp.maximum(h, 0.0)
    w, b = refs[idx], refs[idx + 1]
    h = jnp.dot(h, w[...], preferred_element_type=jnp.float32) + b[...]
    if clip is not None:
        h = jnp.clip(h, clip[0], clip[1])
    o_ref[...] = h


# ------------------------------ kernel wrappers ----------------------------- #

def _x_in_spec(n_pad, c_in, tk):
    """X spec: whole-array resident when it fits, else per-k-tile stream."""
    x_resident = (n_pad * c_in * 2) <= X_RESIDENT_BYTES
    if x_resident:
        return pl.BlockSpec((n_pad, c_in), lambda i, k: (0, 0)), True
    return pl.BlockSpec((tk, c_in), lambda i, k: (k, 0)), False


def gcn_layer(a_hat, x, w, b, scale, shift, *, n_valid, tile):
    """H = (A_hat @ relu(X*scale+shift)) @ W + b, plus partial BN stats of H."""
    n_pad = a_hat.shape[0]
    c_in = x.shape[1]
    c_out = w.shape[1]
    tm = tk = tile
    grid = (n_pad // tm, n_pad // tk)
    n_tiles = n_pad // tm
    norm_x = scale is not None

    x_spec, x_resident = _x_in_spec(n_pad, c_in, tk)
    in_specs = [pl.BlockSpec((tm, tk), lambda i, k: (i, k)), x_spec]   # A_hat, X (bf16)
    operands = [a_hat, x]
    if norm_x:
        in_specs += [pl.BlockSpec((1, c_in), lambda i, k: (0, 0)),
                     pl.BlockSpec((1, c_in), lambda i, k: (0, 0))]
        operands += [scale, shift]
    in_specs += [pl.BlockSpec((c_in, c_out), lambda i, k: (0, 0)),     # W (bf16, whole)
                 pl.BlockSpec((1, c_out), lambda i, k: (0, 0))]        # bias (f32)
    operands += [w, b]

    kern = functools.partial(_gcn_layer_kernel, norm_x=norm_x, n_valid=n_valid,
                             tile_rows=tm, x_resident=x_resident)
    h, stats = pl.pallas_call(
        kern,
        out_shape=(jax.ShapeDtypeStruct((n_pad, c_out), jnp.bfloat16),
                   jax.ShapeDtypeStruct((n_tiles, 2, c_out), jnp.float32)),
        grid_spec=pltpu.PrefetchScalarGridSpec(
            num_scalar_prefetch=0,
            grid=grid,
            in_specs=in_specs,
            out_specs=(pl.BlockSpec((tm, c_out), lambda i, k: (i, 0)),
                       pl.BlockSpec((1, 2, c_out), lambda i, k: (i, 0, 0))),
            scratch_shapes=[pltpu.VMEM((tm, c_in), jnp.float32)],
        ),
        # Row tiles independent -> megacore sharding on v7x; k is the reduction.
        compiler_params=pltpu.CompilerParams(
            dimension_semantics=("parallel", "arbitrary"),
            vmem_limit_bytes=VMEM_LIMIT_BYTES),
    )(*operands)
    return h, stats


def gcn_pool_layer(a_hat, x, seg, w, b, scale, shift, *, tile):
    """Last GCN layer + scatter-sum pooling; returns summed [G_pad, C] pooled output."""
    n_pad = a_hat.shape[0]
    c_in = x.shape[1]
    c_out = w.shape[1]
    g_pad = seg.shape[0]
    tm = tk = tile
    grid = (n_pad // tm, n_pad // tk)
    n_tiles = n_pad // tm
    norm_x = scale is not None

    x_spec, x_resident = _x_in_spec(n_pad, c_in, tk)
    in_specs = [pl.BlockSpec((tm, tk), lambda i, k: (i, k)), x_spec]
    operands = [a_hat, x]
    if norm_x:
        in_specs += [pl.BlockSpec((1, c_in), lambda i, k: (0, 0)),
                     pl.BlockSpec((1, c_in), lambda i, k: (0, 0))]
        operands += [scale, shift]
    in_specs += [pl.BlockSpec((g_pad, tm), lambda i, k: (0, i)),       # one-hot segs (bf16)
                 pl.BlockSpec((c_in, c_out), lambda i, k: (0, 0)),     # W (bf16)
                 pl.BlockSpec((1, c_out), lambda i, k: (0, 0))]        # bias (f32)
    operands += [seg, w, b]

    kern = functools.partial(_gcn_pool_kernel, norm_x=norm_x, x_resident=x_resident)
    partials = pl.pallas_call(
        kern,
        out_shape=jax.ShapeDtypeStruct((n_tiles, g_pad, c_out), jnp.float32),
        grid_spec=pltpu.PrefetchScalarGridSpec(
            num_scalar_prefetch=0,
            grid=grid,
            in_specs=in_specs,
            out_specs=pl.BlockSpec((1, g_pad, c_out), lambda i, k: (i, 0, 0)),
            scratch_shapes=[pltpu.VMEM((tm, c_in), jnp.float32)],
        ),
        compiler_params=pltpu.CompilerParams(
            dimension_semantics=("parallel", "arbitrary"),
            vmem_limit_bytes=VMEM_LIMIT_BYTES),
    )(*operands)
    return jnp.sum(partials, axis=0)                    # [g_pad, c_out] pooled sum


def mlp_head(z, mlp_w, mlp_b, mlp_gamma, mlp_beta, clip):
    """Entire MLP head (+ clip) fused into a single pallas_call (tiny operands)."""
    num_hidden = len(mlp_w) - 1
    g = z.shape[0]
    c_out = mlp_w[-1].shape[1]
    operands = [z]
    for i in range(num_hidden):
        operands += [mlp_w[i], mlp_b[i], mlp_gamma[i], mlp_beta[i]]
    operands += [mlp_w[-1], mlp_b[-1]]
    kern = functools.partial(_mlp_head_kernel, num_hidden=num_hidden, clip=clip)
    return pl.pallas_call(
        kern,
        out_shape=jax.ShapeDtypeStruct((g, c_out), jnp.float32),
        in_specs=[_vmem_spec()] * len(operands),
        out_specs=_vmem_spec(),
    )(*operands)


def _bn_scale_shift(stats, gamma, beta, n_valid):
    """Reduce per-tile partial stats into a fused affine (scale, shift) for BN+ReLU."""
    total = jnp.sum(stats, axis=0)                       # (2, C)
    inv_n = 1.0 / float(n_valid)
    mean = total[0:1] * inv_n
    var = jnp.maximum(total[1:2] * inv_n - mean * mean, 0.0)
    scale = jax.lax.rsqrt(var + BN_EPS) * gamma          # (1, C)
    shift = beta - mean * scale
    return scale, shift


# --------------------------- glue: graph preprocessing ---------------------- #

def build_normalized_adjacency(edge_index, num_nodes, n_pad):
    """A_hat = D^-1/2 (A + I) D^-1/2, built directly at padded size in bf16.
    NOTE: pre-existing self-loops / duplicate edges are double-counted, matching the
    reference dense construction."""
    src, dst = edge_index[0], edge_index[1]
    a = jnp.zeros((n_pad, n_pad), jnp.float32)
    a = a.at[dst, src].add(1.0)                          # messages flow src -> dst
    diag = jnp.arange(num_nodes)
    a = a.at[diag, diag].add(1.0)                        # self-loops on real nodes only
    deg = a.sum(axis=1)                                  # padded rows have deg 0
    dinv = jnp.where(deg > 0, jax.lax.rsqrt(jnp.maximum(deg, 1e-12)), 0.0)
    a_hat = dinv[:, None] * a * dinv[None, :]
    return a_hat.astype(jnp.bfloat16)                    # bf16 halves the dominant stream


def build_segment_matrix(batch, num_graphs, n_pad, g_pad):
    s = (batch[None, :] == jnp.arange(num_graphs)[:, None]).astype(jnp.float32)
    s = jnp.pad(s, ((0, g_pad - num_graphs), (0, n_pad - batch.shape[0])))
    return s.astype(jnp.bfloat16)                        # 0/1 exact in bf16


# ------------------------------ parameter setup ----------------------------- #

def init_params(key, in_channels, out_channels,
                gnn_hidden=32, gnn_layers=3, mlp_hidden=32, mlp_layers=3):
    params = {"gcn_w": [], "gcn_b": [], "gcn_gamma": [], "gcn_beta": [],
              "mlp_w": [], "mlp_b": [], "mlp_gamma": [], "mlp_beta": []}

    def _w(k, cin, cout):
        return 0.1 * jax.random.normal(k, (cin, cout), jnp.float32)

    gcn_dims = [in_channels] + [gnn_hidden] * gnn_layers
    for i in range(gnn_layers):
        key, k1, k2, k3, k4 = jax.random.split(key, 5)
        params["gcn_w"].append(_w(k1, gcn_dims[i], gcn_dims[i + 1]))
        params["gcn_b"].append(0.01 * jax.random.normal(k2, (gcn_dims[i + 1],), jnp.float32))
        params["gcn_gamma"].append(1.0 + 0.1 * jax.random.normal(k3, (gcn_dims[i + 1],), jnp.float32))
        params["gcn_beta"].append(0.1 * jax.random.normal(k4, (gcn_dims[i + 1],), jnp.float32))

    mlp_dims = [gnn_hidden] + [mlp_hidden] * (mlp_layers - 1) + [out_channels]
    for i in range(mlp_layers):
        key, k1, k2, k3, k4 = jax.random.split(key, 5)
        params["mlp_w"].append(_w(k1, mlp_dims[i], mlp_dims[i + 1]))
        params["mlp_b"].append(0.01 * jax.random.normal(k2, (mlp_dims[i + 1],), jnp.float32))
        params["mlp_gamma"].append(1.0 + 0.1 * jax.random.normal(k3, (mlp_dims[i + 1],), jnp.float32))
        params["mlp_beta"].append(0.1 * jax.random.normal(k4, (mlp_dims[i + 1],), jnp.float32))
    return params


def _pad_mat(w, rows, cols):
    return jnp.pad(w, ((0, rows - w.shape[0]), (0, cols - w.shape[1])))


def _pad_vec(v, cols, fill=0.0):
    return jnp.pad(v, (0, cols - v.shape[0]), constant_values=fill).reshape(1, cols)


def pad_params(params):
    """Zero-pad channel dims to 128 lanes; GCN weights stored bf16 (bf16 MXU epilogue)."""
    out = {k: [] for k in params}
    for prefix in ("gcn", "mlp"):
        w_dtype = jnp.bfloat16 if prefix == "gcn" else jnp.float32
        for i in range(len(params[f"{prefix}_w"])):
            w = params[f"{prefix}_w"][i]
            rp, cp = _round_up(w.shape[0], LANE), _round_up(w.shape[1], LANE)
            out[f"{prefix}_w"].append(_pad_mat(w, rp, cp).astype(w_dtype))
            out[f"{prefix}_b"].append(_pad_vec(params[f"{prefix}_b"][i], cp))
            out[f"{prefix}_gamma"].append(_pad_vec(params[f"{prefix}_gamma"][i], cp, fill=1.0))
            out[f"{prefix}_beta"].append(_pad_vec(params[f"{prefix}_beta"][i], cp))
    return out


# ------------------------------- forward pass ------------------------------- #

def homogeneous_gcn_forward(params_p, x_pad, a_hat, seg, *, num_nodes, num_graphs,
                            out_channels, tile, clip_output=None):
    # GCN encoder: conv -> BN -> ReLU after every layer except the last.  BN stats are
    # produced by each layer kernel; the BN apply + ReLU is fused into the NEXT layer's
    # X-read path (scale/shift operands), so intermediate activations travel as bf16 h.
    n_gcn = len(params_p["gcn_w"])
    z = x_pad                                   # bf16 [N_pad, C_pad]
    scale = shift = None
    for i in range(n_gcn - 1):
        z, stats = gcn_layer(a_hat, z, params_p["gcn_w"][i], params_p["gcn_b"][i],
                             scale, shift, n_valid=num_nodes, tile=tile)
        scale, shift = _bn_scale_shift(stats, params_p["gcn_gamma"][i],
                                       params_p["gcn_beta"][i], num_nodes)
    # Last GCN layer fused with scatter-sum pooling (per-row-tile partials, summed here).
    pooled = gcn_pool_layer(a_hat, z, seg, params_p["gcn_w"][-1], params_p["gcn_b"][-1],
                            scale, shift, tile=tile)
    pooled = pooled[:num_graphs]                # drop padded graph rows before MLP BN
    # Fused MLP head (plain last layer) with optional in-kernel output clip.
    out = mlp_head(pooled, params_p["mlp_w"], params_p["mlp_b"],
                   params_p["mlp_gamma"], params_p["mlp_beta"], clip_output)
    return out[:, :out_channels]


# ----------------------------------- main ----------------------------------- #

if __name__ == "__main__":
    key = jax.random.PRNGKey(0)
    N, E, G = 16, 40, 2
    in_channels, out_channels = 4, 3

    k_x, k_src, k_dst, k_p = jax.random.split(key, 4)
    x = jax.random.normal(k_x, (N, in_channels), jnp.float32)
    edge_index = jnp.stack([jax.random.randint(k_src, (E,), 0, N),
                            jax.random.randint(k_dst, (E,), 0, N)])
    batch = jnp.concatenate([jnp.zeros(N // 2, jnp.int32),
                             jnp.ones(N - N // 2, jnp.int32)])

    n_pad, tile = _choose_tiles(N)
    c_in_pad = _round_up(in_channels, LANE)
    g_pad = _round_up(G, 8)

    a_hat = build_normalized_adjacency(edge_index, N, n_pad)
    seg = build_segment_matrix(batch, G, n_pad, g_pad)
    x_pad = jnp.pad(x, ((0, n_pad - N), (0, c_in_pad - in_channels))).astype(jnp.bfloat16)

    params = pad_params(init_params(k_p, in_channels, out_channels))

    out = homogeneous_gcn_forward(params, x_pad, a_hat, seg,
                                  num_nodes=N, num_graphs=G,
                                  out_channels=out_channels, tile=tile,
                                  clip_output=None)
    out = jax.block_until_ready(out)
    assert out.shape == (G, out_channels) and out.dtype == jnp.float32
    print("KERNEL_OK")
</pallas_src>

<mosaic_0001>
module attributes {stable_mosaic.version = 11 : i64} {
  func.func @_gcn_layer_kernel(%arg0: i32, %arg1: i32, %arg2: memref<256x256xbf16, #tpu.memory_space<vmem>>, %arg3: memref<256x128xbf16, #tpu.memory_space<vmem>>, %arg4: memref<128x128xbf16, #tpu.memory_space<vmem>>, %arg5: memref<1x128xf32, #tpu.memory_space<vmem>>, %arg6: memref<256x128xbf16, #tpu.memory_space<vmem>>, %arg7: memref<1x2x128xf32, #tpu.memory_space<vmem>>, %arg8: memref<256x128xf32, #tpu.memory_space<vmem>>) attributes {dimension_semantics = [#tpu.dimension_semantics<parallel>, #tpu.dimension_semantics<arbitrary>], iteration_bounds = array<i64: 1, 1>, scalar_prefetch = 0 : i64, scratch_operands = 1 : i64, tpu.core_type = #tpu.core_type<tc>, window_params = [{transform_indices = @transform_0, window_bounds = array<i64: 256, 256>}, {pipeline_mode = #tpu.pipeline_mode<synchronous>, transform_indices = @transform_1, window_bounds = array<i64: 256, 128>}, {pipeline_mode = #tpu.pipeline_mode<synchronous>, transform_indices = @transform_2, window_bounds = array<i64: 128, 128>}, {pipeline_mode = #tpu.pipeline_mode<synchronous>, transform_indices = @transform_3, window_bounds = array<i64: 1, 128>}, {transform_indices = @transform_4, window_bounds = array<i64: 256, 128>}, {transform_indices = @transform_5, window_bounds = array<i64: 1, 2, 128>}]} {
    %c0_i32 = arith.constant 0 : i32
    %0 = arith.cmpi eq, %arg1, %c0_i32 : i32
    %1 = arith.extui %0 : i1 to i32
    %c0_i32_0 = arith.constant 0 : i32
    %2 = arith.cmpi ne, %1, %c0_i32_0 : i32
    scf.if %2 {
      %cst_9 = arith.constant 0.000000e+00 : f32
      %15 = vector.broadcast %cst_9 : f32 to vector<256x128xf32>
      %c0_10 = arith.constant 0 : index
      %c0_11 = arith.constant 0 : index
      %16 = vector.load %arg8[%c0_10, %c0_11] : memref<256x128xf32, #tpu.memory_space<vmem>>, vector<256x128xf32>
      tpu.vector_store %arg8[%c0_10, %c0_11], %15 {strides = array<i32>} : memref<256x128xf32, #tpu.memory_space<vmem>>, vector<256x128xf32>,
    } else {
    }
    %c256_i32 = arith.constant 256 : i32
    %3 = arith.muli %arg1, %c256_i32 : i32
    %4 = tpu.assume_multiple %3, 256 : i32
    %5 = arith.index_cast %4 : i32 to index
    %c0 = arith.constant 0 : index
    %6 = vector.load %arg3[%5, %c0] : memref<256x128xbf16, #tpu.memory_space<vmem>>, vector<256x128xbf16>
    %c0_1 = arith.constant 0 : index
    %c0_2 = arith.constant 0 : index
    %7 = vector.load %arg8[%c0_1, %c0_2] : memref<256x128xf32, #tpu.memory_space<vmem>>, vector<256x128xf32>
    %c0_3 = arith.constant 0 : index
    %c0_4 = arith.constant 0 : index
    %8 = vector.load %arg2[%c0_3, %c0_4] : memref<256x256xbf16, #tpu.memory_space<vmem>>, vector<256x256xbf16>
    %cst = arith.constant dense<0.000000e+00> : vector<256x128xf32>
    %9 = tpu.matmul %8, %6, %cst {dimension_numbers = #tpu.dot_dimension_numbers<[1], [0], [0], [1], [0, 0, 1, 1], [], []>} : vector<256x256xbf16>, vector<256x128xbf16>, vector<256x128xf32> -> vector<256x128xf32>
    %10 = arith.addf %7, %9 : vector<256x128xf32>
    %c0_5 = arith.constant 0 : index
    %c0_6 = arith.constant 0 : index
    %11 = vector.load %arg8[%c0_5, %c0_6] : memref<256x128xf32, #tpu.memory_space<vmem>>, vector<256x128xf32>
    tpu.vector_store %arg8[%c0_5, %c0_6], %10 {strides = array<i32>} : memref<256x128xf32, #tpu.memory_space<vmem>>, vector<256x128xf32>,
    %c0_i32_7 = arith.constant 0 : i32
    %12 = arith.cmpi eq, %arg1, %c0_i32_7 : i32
    %13 = arith.extui %12 : i1 to i32
    %c0_i32_8 = arith.constant 0 : i32
    %14 = arith.cmpi ne, %13, %c0_i32_8 : i32
    scf.if %14 {
      %c0_9 = arith.constant 0 : index
      %c0_10 = arith.constant 0 : index
      %15 = vector.load %arg8[%c0_9, %c0_10] : memref<256x128xf32, #tpu.memory_space<vmem>>, vector<256x128xf32>
      %16 = arith.truncf %15 : vector<256x128xf32> to vector<256x128xbf16>
      %c0_11 = arith.constant 0 : index
      %c0_12 = arith.constant 0 : index
      %17 = vector.load %arg4[%c0_11, %c0_12] : memref<128x128xbf16, #tpu.memory_space<vmem>>, vector<128x128xbf16>
      %cst_13 = arith.constant dense<0.000000e+00> : vector<256x128xf32>
      %18 = tpu.matmul %16, %17, %cst_13 {dimension_numbers = #tpu.dot_dimension_numbers<[1], [0], [0], [1], [0, 0, 1, 1], [], []>} : vector<256x128xbf16>, vector<128x128xbf16>, vector<256x128xf32> -> vector<256x128xf32>
      %c0_14 = arith.constant 0 : index
      %c0_15 = arith.constant 0 : index
      %19 = vector.load %arg5[%c0_14, %c0_15] : memref<1x128xf32, #tpu.memory_space<vmem>>, vector<1x128xf32>
      %20 = vector.broadcast %19 : vector<1x128xf32> to vector<256x128xf32>
      %21 = arith.addf %18, %20 : vector<256x128xf32>
      %22 = arith.truncf %21 : vector<256x128xf32> to vector<256x128xbf16>
      %c0_16 = arith.constant 0 : index
      %c0_17 = arith.constant 0 : index
      %23 = vector.load %arg6[%c0_16, %c0_17] : memref<256x128xbf16, #tpu.memory_space<vmem>>, vector<256x128xbf16>
      tpu.vector_store %arg6[%c0_16, %c0_17], %22 {strides = array<i32>} : memref<256x128xbf16, #tpu.memory_space<vmem>>, vector<256x128xbf16>,
      %24 = tpu.iota {dimensions = array<i32: 0>} : vector<256x128xi32>
      %c256_i32_18 = arith.constant 256 : i32
      %25 = arith.muli %arg0, %c256_i32_18 : i32
      %26 = vector.broadcast %25 : i32 to vector<256x128xi32>
      %27 = arith.addi %24, %26 : vector<256x128xi32>
      %c16_i32 = arith.constant 16 : i32
      %28 = vector.broadcast %c16_i32 : i32 to vector<256x128xi32>
      %29 = arith.cmpi slt, %27, %28 : vector<256x128xi32>
      %cst_19 = arith.constant 0.000000e+00 : f32
      %30 = vector.broadcast %cst_19 : f32 to vector<256x128xf32>
      %31 = arith.select %29, %21, %30 : vector<256x128xi1>, vector<256x128xf32>
      %cst_20 = arith.constant dense<0.000000e+00> : vector<128xf32>
      %32 = vector.multi_reduction <add>, %31, %cst_20 [0] : vector<256x128xf32> to vector<128xf32>
      %33 = vector.shape_cast %32 : vector<128xf32> to vector<1x128xf32>
      %34 = arith.mulf %31, %31 : vector<256x128xf32>
      %cst_21 = arith.constant dense<0.000000e+00> : vector<128xf32>
      %35 = vector.multi_reduction <add>, %34, %cst_21 [0] : vector<256x128xf32> to vector<128xf32>
      %36 = vector.shape_cast %35 : vector<128xf32> to vector<1x128xf32>
      %37 = tpu.concatenate %33, %36 in 0 : vector<1x128xf32>, vector<1x128xf32> -> vector<2x128xf32>
      %38 = vector.shape_cast %37 : vector<2x128xf32> to vector<1x2x128xf32>
      %c0_22 = arith.constant 0 : index
      %c0_23 = arith.constant 0 : index
      %c0_24 = arith.constant 0 : index
      %39 = vector.load %arg7[%c0_22, %c0_23, %c0_24] : memref<1x2x128xf32, #tpu.memory_space<vmem>>, vector<1x2x128xf32>
      tpu.vector_store %arg7[%c0_22, %c0_23, %c0_24], %38 {strides = array<i32>} : memref<1x2x128xf32, #tpu.memory_space<vmem>>, vector<1x2x128xf32>,
    } else {
    }
    return
  }
  func.func @transform_0(%arg0: i32, %arg1: i32) -> (i32, i32) {
    %c0_i32 = arith.constant 0 : i32
    return %arg0, %arg1 : i32, i32
  }
  func.func @transform_1(%arg0: i32, %arg1: i32) -> (i32, i32) {
    %c0_i32 = arith.constant 0 : i32
    %c0_i32_0 = arith.constant 0 : i32
    %c0_i32_1 = arith.constant 0 : i32
    return %c0_i32, %c0_i32_0 : i32, i32
  }
  func.func @transform_2(%arg0: i32, %arg1: i32) -> (i32, i32) {
    %c0_i32 = arith.constant 0 : i32
    %c0_i32_0 = arith.constant 0 : i32
    %c0_i32_1 = arith.constant 0 : i32
    return %c0_i32, %c0_i32_0 : i32, i32
  }
  func.func @transform_3(%arg0: i32, %arg1: i32) -> (i32, i32) {
    %c0_i32 = arith.constant 0 : i32
    %c0_i32_0 = arith.constant 0 : i32
    %c0_i32_1 = arith.constant 0 : i32
    return %c0_i32, %c0_i32_0 : i32, i32
  }
  func.func @transform_4(%arg0: i32, %arg1: i32) -> (i32, i32) {
    %c0_i32 = arith.constant 0 : i32
    %c0_i32_0 = arith.constant 0 : i32
    return %arg0, %c0_i32 : i32, i32
  }
  func.func @transform_5(%arg0: i32, %arg1: i32) -> (i32, i32, i32) {
    %c0_i32 = arith.constant 0 : i32
    %c0_i32_0 = arith.constant 0 : i32
    %c0_i32_1 = arith.constant 0 : i32
    return %arg0, %c0_i32, %c0_i32_0 : i32, i32, i32
  }
}

</mosaic_0001>

<bundles_post_ra>
// kernel: tpu_custom_call.1
= control target key start
LH: loop header
LB: loop body
LE: loop exit
PB: predicated region body
PF: predicated region fallthrough
CT: control target
= control target key end

     0   :  { %11 = vsyncpa [#allocation4], 0  ;;  %s2194_s0 = inlined_call_operand.hbm [shape: bf16[256,256], index: 0, kind: input, shape index: {}]   ;;  %s2195_s1 = inlined_call_operand.hbm [shape: bf16[256,128], index: 1, kind: input, shape index: {}]   ;;  %s2196_s2 = inlined_call_operand.hbm [shape: bf16[128,128], index: 2, kind: input, shape index: {}]   ;;  %s2197_s3 = inlined_call_operand.vmem [shape: f32[1,128], index: 3, kind: input, shape index: {}]   ;;  %s2198_s4 = inlined_call_operand.hbm [shape: bf16[256,128], index: 4, kind: output, shape index: {0}]   ;;  %s2199_s5 = inlined_call_operand.hbm [shape: f32[1,2,128], index: 5, kind: output, shape index: {1}]  }
   0x1   :  { %12 = vsyncpa [#allocation7], 0 }
   0x2   :  { %13 = vsyncpa [#allocation5], 0 }
   0x3   :  { %14 = vsyncpa [#allocation11], 0  ;;  %s2013_s18 = smov [#allocation6]   ;;  %s1895_s22 = scalar_lea.hbm %s2195_s1, 2048 }
   0x4   :  { %s32_s19 = sshll.u32 %s2013_s18, 4  ;;  %p1896_p0 = scmp.ne.s32.totalorder %s2195_s1, %s1895_s22  ;;  %s33_s19 = int_to_ptr.vmem [resolvable:$true] %s32_s19 }
   0x5   :  { %p1899_p1 = scmp.lt.u32.totalorder %s1895_s22, %s2195_s1 }
   0x7   :  { %p1901_p2 = pnand %p1899_p1, %p1896_p0 }
   0x9   :  { %1904 = shalt.err (!%p1901_p2)
}
   0xa   :  { %s1905_s27 = scalar_lea.vmem %s33_s19, 2048  ;;  %p1910_p4 = scmp.lt.s32.totalorder %s33_s19, %s33_s19 }
   0xb   :  { %p1906_p3 = scmp.ne.s32.totalorder %s33_s19, %s1905_s27  ;;  %p1911_p5 = scmp.lt.s32.totalorder %s1905_s27, %s1905_s27 }
   0xd   :  { %p1912_p6 = por %p1911_p5, %p1910_p4 }
   0xf   :  { %p1913_p7 = pnand %p1912_p6, %p1906_p3 }
  0x11   :  { %1916 = shalt.err (!%p1913_p7)
}
  0x12   :  { %s2014_s28 = smov 64   ;;  %s2015_s29 = smov 4  }
  0x13   :  { %38 = dma.hbm_to_vmem [thread:$0]  %s2195_s1, 2048, %s33_s19, [#allocation7], %s2014_s28, %s2014_s28, %s2015_s29  }
  0x14   :  { %s2016_s7 = smov [#allocation3]   ;;  %s1917_s11 = scalar_lea.hbm %s2194_s0, 4096 }
  0x15   :  { %s20_s8 = sshll.u32 %s2016_s7, 4  ;;  %p1918_p8 = scmp.ne.s32.totalorder %s2194_s0, %s1917_s11  ;;  %s21_s8 = int_to_ptr.vmem [resolvable:$true] %s20_s8 }
  0x16   :  { %p1921_p9 = scmp.lt.u32.totalorder %s1917_s11, %s2194_s0 }
  0x18   :  { %p1923_p10 = pnand %p1921_p9, %p1918_p8 }
  0x1a   :  { %1926 = shalt.err (!%p1923_p10)
}
  0x1b   :  { %s1927_s16 = scalar_lea.vmem %s21_s8, 4096  ;;  %p1932_p12 = scmp.lt.s32.totalorder %s21_s8, %s21_s8 }
  0x1c   :  { %p1928_p11 = scmp.ne.s32.totalorder %s21_s8, %s1927_s16  ;;  %p1933_p13 = scmp.lt.s32.totalorder %s1927_s16, %s1927_s16 }
  0x1e   :  { %p1934_p0 = por %p1933_p13, %p1932_p12 }
  0x20   :  { %p1935_p1 = pnand %p1934_p0, %p1928_p11 }
  0x22   :  { %1938 = shalt.err (!%p1935_p1)
}
  0x23   :  { %s2017_s1 = smov 128   ;;  %s2018_s17 = smov 8  }
  0x24   :  { %26 = dma.hbm_to_vmem [thread:$0]  %s2194_s0, 4096, %s21_s8, [#allocation4], %s2017_s1, %s2017_s1, %s2018_s17  }
  0x25   :  { %s2019_s20 = smov [#allocation8]   ;;  %s1939_s24 = scalar_lea.hbm %s2196_s2, 1024 }
  0x26   :  { %s44_s21 = sshll.u32 %s2019_s20, 4  ;;  %p1940_p2 = scmp.ne.s32.totalorder %s2196_s2, %s1939_s24  ;;  %s45_s21 = int_to_ptr.vmem [resolvable:$true] %s44_s21 }
  0x27   :  { %p1943_p3 = scmp.lt.u32.totalorder %s1939_s24, %s2196_s2 }
  0x29   :  { %p1945_p4 = pnand %p1943_p3, %p1940_p2 }
  0x2b   :  { %1948 = shalt.err (!%p1945_p4)
}
  0x2c   :  { %s1949_s6 = scalar_lea.vmem %s45_s21, 1024  ;;  %p1954_p6 = scmp.lt.s32.totalorder %s45_s21, %s45_s21 }
  0x2d   :  { %p1950_p5 = scmp.ne.s32.totalorder %s45_s21, %s1949_s6  ;;  %p1955_p7 = scmp.lt.s32.totalorder %s1949_s6, %s1949_s6 }
  0x2f   :  { %p1956_p8 = por %p1955_p7, %p1954_p6 }
  0x31   :  { %p1957_p9 = pnand %p1956_p8, %p1950_p5 }
  0x33   :  { %1960 = shalt.err (!%p1957_p9)
}
  0x34   :  { %50 = dma.hbm_to_vmem [thread:$0]  %s2196_s2, 1024, %s45_s21, [#allocation7], %s2014_s28, %s2014_s28, %s2015_s29  }
  0x35   :  { %2005 = dma.done.wait [#allocation4], 4096  }
  0x36   :  { %2006 = vsyncadd [#allocation4], 4294963200 }
  0x37   :  { %2007 = dma.done.wait [#allocation7], 3072  }
  0x38   :  { %2008 = vsyncadd [#allocation7], 4294964224  ;;  %v1823_v0 = vld [vmem:[#allocation6 + $0x40] sm:$0xff]   ;;  %v1825_v2 = vld [vmem:[#allocation6 + $0x48] sm:$0xff]   ;;  %vm1361_vm0 = vcmask 1040384  }
  0x39   :  { %v1824_v1 = vld [vmem:[#allocation6] sm:$0xff]   ;;  %1614 = vmatprep.subr.bf16.mxu0 %v1823_v0  ;;  %1798 = vmatprep.subr.bf16.mxu1 %v1823_v0  ;;  %v1826_v3 = vld [vmem:[#allocation6 + $0x8] sm:$0xff]   ;;  %v1827_v4 = vld [vmem:[#allocation6 + $0x50] sm:$0xff]  }
  0x3a   :  { %1615 = vmatpush3.bf16.msra.mxu0 %v1824_v1  ;;  %1806 = vmatpush3.bf16.msra.mxu1 %v1824_v1  ;;  %v1828_v5 = vld [vmem:[#allocation6 + $0x10] sm:$0xff]   ;;  %v1829_v6 = vld [vmem:[#allocation6 + $0x58] sm:$0xff]   ;;  %v1831_v8 = vld [vmem:[#allocation6 + $0x60] sm:$0xff]  }
  0x3b   :  { %1616 = vmatprep.subr.bf16.mxu0 %v1825_v2  ;;  %1799 = vmatprep.subr.bf16.mxu1 %v1825_v2  ;;  %v1830_v7 = vld [vmem:[#allocation6 + $0x18] sm:$0xff]   ;;  %v1832_v9 = vld [vmem:[#allocation6 + $0x20] sm:$0xff]   ;;  %v1833_v10 = vld [vmem:[#allocation6 + $0x68] sm:$0xff]  }
  0x3c   :  { %v1841_v11 = vld [vmem:[#allocation3 + $0x4] ss:$8 sps:$4 sm:$0xff]   ;;  %v1835_v13 = vld [vmem:[#allocation6 + $0x70] sm:$0xff]   ;;  %v1837_v15 = vld [vmem:[#allocation6 + $0x78] sm:$0xff]  }
  0x3d   :  { %v1834_v12 = vld [vmem:[#allocation6 + $0x28] sm:$0xff]   ;;  %488 = vmatprep.mubr.bf16.mxu0 %v1841_v11  ;;  %v1836_v14 = vld [vmem:[#allocation6 + $0x30] sm:$0xff]   ;;  %v1838_v16 = vld [vmem:[#allocation6 + $0x38] sm:$0xff]  }
  0x3e   :  { %1617 = vmatpush3.bf16.msra.mxu0 %v1826_v3  ;;  %1807 = vmatpush3.bf16.msra.mxu1 %v1826_v3  ;;  %v1839_v17 = vld [vmem:[#allocation3] ss:$8 sps:$4 sm:$0xff]   ;;  %v1871_v18 = vld [vmem:[#allocation3 + $0xc4] ss:$8 sps:$4 sm:$0xff]   ;;  %v1842_v19 = vld [vmem:[#allocation3 + $0x14] ss:$8 sps:$4 sm:$0xff]  }
  0x3f   :  { %1618 = vmatprep.subr.bf16.mxu0 %v1827_v4  ;;  %1800 = vmatprep.subr.bf16.mxu1 %v1827_v4  ;;  %v1869_v20 = vld [vmem:[#allocation3 + $0xc0] ss:$8 sps:$4 sm:$0xff]   ;;  %v1875_v21 = vld [vmem:[#allocation3 + $0xd4] ss:$8 sps:$4 sm:$0xff]   ;;  %v1844_v22 = vld [vmem:[#allocation3 + $0x10] ss:$8 sps:$4 sm:$0xff]  }
  0x40   :  { %584 = vmatprep.mubr.bf16.mxu1 %v1871_v18  ;;  %v1845_v23 = vld [vmem:[#allocation3 + $0x24] ss:$8 sps:$4 sm:$0xff]   ;;  %v1877_v24 = vld [vmem:[#allocation3 + $0xd0] ss:$8 sps:$4 sm:$0xff]   ;;  %v1847_v29 = vld [vmem:[#allocation3 + $0x20] ss:$8 sps:$4 sm:$0xff]  }
  0x41   :  { %v1887_v25 = vld [vmem:[#allocation8] sm:$0xff]   ;;  %v1888_v26 = vld [vmem:[#allocation8 + $0x8] sm:$0xff]   ;;  %v1889_v28 = vld [vmem:[#allocation8 + $0x10] sm:$0xff]  }
  0x42   :  { %1619 = vmatpush3.bf16.msra.mxu0 %v1828_v5  ;;  %1808 = vmatpush3.bf16.msra.mxu1 %v1828_v5  ;;  %v1881_v27 = vld [vmem:[#allocation3 + $0xe4] ss:$8 sps:$4 sm:$0xff]   ;;  %v1890_v30 = vld [vmem:[#allocation8 + $0x18] sm:$0xff]   ;;  %v1883_v32 = vld [vmem:[#allocation3 + $0xe0] ss:$8 sps:$4 sm:$0xff]  }
  0x43   :  { %1620 = vmatprep.subr.bf16.mxu0 %v1829_v6  ;;  %1801 = vmatprep.subr.bf16.mxu1 %v1829_v6  ;;  %v1848_v31 = vld [vmem:[#allocation3 + $0x34] ss:$8 sps:$4 sm:$0xff]   ;;  %v1850_v34 = vld [vmem:[#allocation3 + $0x30] ss:$8 sps:$4 sm:$0xff]   ;;  %v1851_v35 = vld [vmem:[#allocation3 + $0x44] ss:$8 sps:$4 sm:$0xff]  }
  0x44   :  { %v1884_v33 = vld [vmem:[#allocation3 + $0xf4] ss:$8 sps:$4 sm:$0xff]   ;;  %v1886_v36 = vld [vmem:[#allocation3 + $0xf0] ss:$8 sps:$4 sm:$0xff]   ;;  %v1853_v37 = vld [vmem:[#allocation3 + $0x40] ss:$8 sps:$4 sm:$0xff]  }
  0x45   :  { %v1854_v38 = vld [vmem:[#allocation3 + $0x54] ss:$8 sps:$4 sm:$0xff]   ;;  %v1856_v39 = vld [vmem:[#allocation3 + $0x50] ss:$8 sps:$4 sm:$0xff]   ;;  %v1857_v40 = vld [vmem:[#allocation3 + $0x64] ss:$8 sps:$4 sm:$0xff]  }
  0x46   :  { %1621 = vmatpush3.bf16.msra.mxu0 %v1830_v7  ;;  %1809 = vmatpush3.bf16.msra.mxu1 %v1830_v7  ;;  %v1859_v41 = vld [vmem:[#allocation3 + $0x60] ss:$8 sps:$4 sm:$0xff]   ;;  %v1860_v42 = vld [vmem:[#allocation3 + $0x74] ss:$8 sps:$4 sm:$0xff]   ;;  %v1862_v43 = vld [vmem:[#allocation3 + $0x70] ss:$8 sps:$4 sm:$0xff]  }
  0x47   :  { %1622 = vmatprep.subr.bf16.mxu0 %v1831_v8  ;;  %1802 = vmatprep.subr.bf16.mxu1 %v1831_v8  ;;  %v1863_v44 = vld [vmem:[#allocation3 + $0x84] ss:$8 sps:$4 sm:$0xff]   ;;  %v1865_v45 = vld [vmem:[#allocation3 + $0x80] ss:$8 sps:$4 sm:$0xff]   ;;  %v1866_v46 = vld [vmem:[#allocation3 + $0x94] ss:$8 sps:$4 sm:$0xff]  }
  0x48   :  { %v1868_v47 = vld [vmem:[#allocation3 + $0x90] ss:$8 sps:$4 sm:$0xff]   ;;  %v1872_v48 = vld [vmem:[#allocation3 + $0xa4] ss:$8 sps:$4 sm:$0xff]   ;;  %v1874_v49 = vld [vmem:[#allocation3 + $0xa0] ss:$8 sps:$4 sm:$0xff]  }
  0x49   :  { %v1878_v50 = vld [vmem:[#allocation3 + $0xb4] ss:$8 sps:$4 sm:$0xff]   ;;  %v1891_v51 = vld [vmem:[#allocation8 + $0x20] sm:$0xff]   ;;  %v1880_v52 = vld [vmem:[#allocation3 + $0xb0] ss:$8 sps:$4 sm:$0xff]  }
  0x4a   :  { %1623 = vmatpush3.bf16.msra.mxu0 %v1832_v9  ;;  %1810 = vmatpush3.bf16.msra.mxu1 %v1832_v9  ;;  %v1892_v53 = vld [vmem:[#allocation8 + $0x28] sm:$0xff]   ;;  %v1893_v54 = vld [vmem:[#allocation8 + $0x30] sm:$0xff]   ;;  %v1894_v55 = vld [vmem:[#allocation8 + $0x38] sm:$0xff]  }
  0x4b   :  { %1624 = vmatprep.subr.bf16.mxu0 %v1833_v10  ;;  %1803 = vmatprep.subr.bf16.mxu1 %v1833_v10 }
  0x4e   :  { %1625 = vmatpush3.bf16.msra.mxu0 %v1834_v12  ;;  %1811 = vmatpush3.bf16.msra.mxu1 %v1834_v12 }
  0x4f   :  { %1626 = vmatprep.subr.bf16.mxu0 %v1835_v13  ;;  %1804 = vmatprep.subr.bf16.mxu1 %v1835_v13 }
  0x52   :  { %1627 = vmatpush3.bf16.msra.mxu0 %v1836_v14  ;;  %1812 = vmatpush3.bf16.msra.mxu1 %v1836_v14 }
  0x53   :  { %1628 = vmatprep.subr.bf16.mxu0 %v1837_v15  ;;  %1805 = vmatprep.subr.bf16.mxu1 %v1837_v15 }
  0x56   :  { %1629 = vmatpush3.bf16.msra.mxu0 %v1838_v16  ;;  %1813 = vmatpush3.bf16.msra.mxu1 %v1838_v16 }
  0x57   :  { %1750 = vmatprep.subr.bf16.mxu1 %v1887_v25 }
  0x59   :  { %489 = vmatmul.mubr.bf16.vlgmr.msra.gmra.mrb[0].mxu0 %v1839_v17  ;;  %585 = vmatmul.mubr.bf16.vlgmr.msra.gmra.mrb[0].mxu1 %v1869_v20 }
  0x5a   :  { %496 = vmatprep.mubr.bf16.mxu0 %v1842_v19  ;;  %592 = vmatprep.mubr.bf16.mxu1 %v1875_v21 }
  0x5b   :  { %1751 = vmatpush3.bf16.msra.mxu1 %v1887_v25 }
  0x5c   :  { %1752 = vmatprep.subr.bf16.mxu1 %v1888_v26 }
  0x5f   :  { %1753 = vmatpush3.bf16.msra.mxu1 %v1888_v26 }
  0x60   :  { %1754 = vmatprep.subr.bf16.mxu1 %v1889_v28 }
  0x61   :  { %497 = vmatmul.mubr.bf16.gmra.mrb[4].mxu0 %v1844_v22  ;;  %593 = vmatmul.mubr.bf16.gmra.mrb[4].mxu1 %v1877_v24 }
  0x62   :  { %504 = vmatprep.mubr.bf16.mxu0 %v1845_v23  ;;  %600 = vmatprep.mubr.bf16.mxu1 %v1881_v27 }
  0x63   :  { %1755 = vmatpush3.bf16.msra.mxu1 %v1889_v28 }
  0x64   :  { %1756 = vmatprep.subr.bf16.mxu1 %v1890_v30 }
  0x67   :  { %1757 = vmatpush3.bf16.msra.mxu1 %v1890_v30 }
  0x68   :  { %1758 = vmatprep.subr.bf16.mxu1 %v1891_v51 }
  0x69   :  { %505 = vmatmul.mubr.bf16.gmra.mrb[8].mxu0 %v1847_v29  ;;  %601 = vmatmul.mubr.bf16.gmra.mrb[8].mxu1 %v1883_v32 }
  0x6a   :  { %512 = vmatprep.mubr.bf16.mxu0 %v1848_v31  ;;  %608 = vmatprep.mubr.bf16.mxu1 %v1884_v33 }
  0x6b   :  { %1759 = vmatpush3.bf16.msra.mxu1 %v1891_v51 }
  0x6c   :  { %1760 = vmatprep.subr.bf16.mxu1 %v1892_v53 }
  0x6f   :  { %1761 = vmatpush3.bf16.msra.mxu1 %v1892_v53 }
  0x70   :  { %1762 = vmatprep.subr.bf16.mxu1 %v1893_v54 }
  0x71   :  { %513 = vmatmul.mubr.bf16.gmra.mrb[12].mxu0 %v1850_v34  ;;  %609 = vmatmul.mubr.bf16.gmra.mrb[12].mxu1 %v1886_v36 }
  0x72   :  { %520 = vmatprep.mubr.bf16.mxu0 %v1851_v35 }
  0x73   :  { %1763 = vmatpush3.bf16.msra.mxu1 %v1893_v54 }
  0x74   :  { %1764 = vmatprep.subr.bf16.mxu1 %v1894_v55 }
  0x77   :  { %1765 = vmatpush3.bf16.msra.mxu1 %v1894_v55 }
  0x79   :  { %521 = vmatmul.mubr.bf16.gmra.mrb[16].mxu0 %v1853_v37 }
  0x7a   :  { %528 = vmatprep.mubr.bf16.mxu0 %v1854_v38 }
  0x81   :  { %529 = vmatmul.mubr.bf16.gmra.mrb[20].mxu0 %v1856_v39 }
  0x82   :  { %536 = vmatprep.mubr.bf16.mxu0 %v1857_v40 }
  0x89   :  { %537 = vmatmul.mubr.bf16.gmra.mrb[24].mxu0 %v1859_v41 }
  0x8a   :  { %544 = vmatprep.mubr.bf16.mxu0 %v1860_v42 }
  0x91   :  { %545 = vmatmul.mubr.bf16.gmra.mrb[28].mxu0 %v1862_v43 }
  0x92   :  { %552 = vmatprep.mubr.bf16.mxu0 %v1863_v44 }
  0x99   :  { %553 = vmatmul.mubr.bf16.gmra.mrb[32].mxu0 %v1865_v45 }
  0x9a   :  { %560 = vmatprep.mubr.bf16.mxu0 %v1866_v46 }
  0xa1   :  { %561 = vmatmul.mubr.bf16.gmra.mrb[36].mxu0 %v1868_v47 }
  0xa2   :  { %568 = vmatprep.mubr.bf16.mxu0 %v1872_v48 }
  0xa9   :  { %569 = vmatmul.mubr.bf16.gmra.mrb[40].mxu0 %v1874_v49 }
  0xaa   :  { %576 = vmatprep.mubr.bf16.mxu0 %v1878_v50 }
  0xb1   :  { %577 = vmatmul.mubr.bf16.gmra.mrb[44].mxu0 %v1880_v52 }
 0x12c   :  { %v1630_v56 = vpop.f32.mrb[0].mxu0  ;;  %v1702_v58 = vpop.f32.mrb[0].mxu1 }
 0x12d   :  { %v1631_v57 = vpop.f32.mrb[1].mxu0  ;;  %v1703_v61 = vpop.f32.mrb[1].mxu1 }
 0x12e   :  { %v1632_v59 = vadd.f32 %v1631_v57, %v1630_v56  ;;  %v1633_v60 = vpop.f32.mrb[2].mxu0  ;;  %v2094_v63 = vadd.f32 %v1703_v61, %v1702_v58  ;;  %v1705_v0 = vpop.f32.mrb[2].mxu1 }
 0x12f   :  { %v1634_v62 = vpop.f32.mrb[3].mxu0  ;;  %v1706_v2 = vpop.f32.mrb[3].mxu1 }
 0x130   :  { %v1635_v1 = vadd.f32 %v1634_v62, %v1633_v60  ;;  %v2096_v3 = vadd.f32 %v1706_v2, %v1705_v0 }
 0x132   :  { %v716_v4 = vpack.c.bf16 %v1635_v1, %v1632_v59  ;;  %v728_v5 = vpack.c.bf16 %v2096_v3, %v2094_v63 }
 0x134   :  { %v1636_v6 = vpop.f32.mrb[4].mxu0  ;;  %1766 = vmatprep.mubr.bf16.mxu1 %v716_v4  ;;  %v1708_v8 = vpop.f32.mrb[4].mxu1 }
 0x135   :  { %v1637_v7 = vpop.f32.mrb[5].mxu0  ;;  %v1709_v11 = vpop.f32.mrb[5].mxu1 }
 0x136   :  { %v1638_v9 = vadd.f32 %v1637_v7, %v1636_v6  ;;  %v1639_v10 = vpop.f32.mrb[6].mxu0  ;;  %v2100_v13 = vadd.f32 %v1709_v11, %v1708_v8  ;;  %v1711_v14 = vpop.f32.mrb[6].mxu1 }
 0x137   :  { %v1640_v12 = vpop.f32.mrb[7].mxu0  ;;  %v1712_v16 = vpop.f32.mrb[7].mxu1 }
 0x138   :  { %v1641_v15 = vadd.f32 %v1640_v12, %v1639_v10  ;;  %v2102_v17 = vadd.f32 %v1712_v16, %v1711_v14 }
 0x13a   :  { %v717_v18 = vpack.c.bf16 %v1641_v15, %v1638_v9  ;;  %v729_v19 = vpack.c.bf16 %v2102_v17, %v2100_v13 }
 0x13c   :  { %v1642_v20 = vpop.f32.mrb[8].mxu0  ;;  %1767 = vmatmul.mubr.bf16.vlgmr.msra.gmra.mrb[16].mxu1 %v717_v18  ;;  %v1714_v22 = vpop.f32.mrb[8].mxu1 }
 0x13d   :  { %v1643_v21 = vpop.f32.mrb[9].mxu0  ;;  %v1715_v25 = vpop.f32.mrb[9].mxu1 }
 0x13e   :  { %v1644_v23 = vadd.f32 %v1643_v21, %v1642_v20  ;;  %v1645_v24 = vpop.f32.mrb[10].mxu0  ;;  %v2106_v27 = vadd.f32 %v1715_v25, %v1714_v22  ;;  %v1717_v28 = vpop.f32.mrb[10].mxu1 }
 0x13f   :  { %v1646_v26 = vpop.f32.mrb[11].mxu0  ;;  %v1718_v30 = vpop.f32.mrb[11].mxu1 }
 0x140   :  { %v1647_v29 = vadd.f32 %v1646_v26, %v1645_v24  ;;  %v2108_v31 = vadd.f32 %v1718_v30, %v1717_v28 }
 0x142   :  { %v718_v32 = vpack.c.bf16 %v1647_v29, %v1644_v23  ;;  %v730_v33 = vpack.c.bf16 %v2108_v31, %v2106_v27 }
 0x144   :  { %v1648_v34 = vpop.f32.mrb[12].mxu0  ;;  %1770 = vmatprep.mubr.bf16.mxu1 %v718_v32  ;;  %v1720_v36 = vpop.f32.mrb[12].mxu1 }
 0x145   :  { %v1649_v35 = vpop.f32.mrb[13].mxu0  ;;  %v1721_v39 = vpop.f32.mrb[13].mxu1 }
 0x146   :  { %v1650_v37 = vadd.f32 %v1649_v35, %v1648_v34  ;;  %v1651_v38 = vpop.f32.mrb[14].mxu0  ;;  %v2112_v41 = vadd.f32 %v1721_v39, %v1720_v36  ;;  %v1723_v42 = vpop.f32.mrb[14].mxu1 }
 0x147   :  { %v1652_v40 = vpop.f32.mrb[15].mxu0  ;;  %v1724_v44 = vpop.f32.mrb[15].mxu1 }
 0x148   :  { %v1653_v43 = vadd.f32 %v1652_v40, %v1651_v38  ;;  %v2114_v45 = vadd.f32 %v1724_v44, %v1723_v42 }
 0x14a   :  { %v719_v46 = vpack.c.bf16 %v1653_v43, %v1650_v37  ;;  %v731_v47 = vpack.c.bf16 %v2114_v45, %v2112_v41 }
 0x14c   :  { %v1654_v48 = vpop.f32.mrb[16].mxu0  ;;  %1771 = vmatmul.mubr.bf16.gmra.mrb[20].mxu1 %v719_v46 }
 0x14d   :  { %v1655_v49 = vpop.f32.mrb[17].mxu0 }
 0x14e   :  { %v1656_v50 = vadd.f32 %v1655_v49, %v1654_v48  ;;  %v1657_v51 = vpop.f32.mrb[18].mxu0 }
 0x14f   :  { %v1658_v52 = vpop.f32.mrb[19].mxu0 }
 0x150   :  { %v1659_v53 = vadd.f32 %v1658_v52, %v1657_v51  ;;  %v2133_v52 = vld [vmem:[%s2197_s3] ss:$0 sm:$0xff]  ;;  %s2020_s3 = smov [#allocation10]  }
 0x151   :  { %s1382_s9 = sshll.u32 %s2020_s3, 4  ;;  %s1383_s9 = int_to_ptr.vmem [resolvable:$true] %s1382_s9 }
 0x152   :  { %v720_v54 = vpack.c.bf16 %v1659_v53, %v1656_v50  ;;  %s1961_s10 = scalar_lea.vmem %s1383_s9, 32  ;;  %p1966_p11 = scmp.lt.s32.totalorder %s1383_s9, %s1383_s9 }
 0x153   :  { %p1962_p10 = scmp.ne.s32.totalorder %s1383_s9, %s1961_s10  ;;  %p1967_p12 = scmp.lt.s32.totalorder %s1961_s10, %s1961_s10 }
 0x154   :  { %v1660_v55 = vpop.f32.mrb[20].mxu0  ;;  %1774 = vmatprep.mubr.bf16.mxu1 %v720_v54 }
 0x155   :  { %v1661_v56 = vpop.f32.mrb[21].mxu0  ;;  %p1968_p13 = por %p1967_p12, %p1966_p11 }
 0x156   :  { %v1662_v57 = vadd.f32 %v1661_v56, %v1660_v55  ;;  %v1663_v58 = vpop.f32.mrb[22].mxu0 }
 0x157   :  { %v1664_v59 = vpop.f32.mrb[23].mxu0  ;;  %p1969_p0 = pnand %p1968_p13, %p1962_p10 }
 0x158   :  { %v1665_v60 = vadd.f32 %v1664_v59, %v1663_v58 }
 0x15a   :  { %v721_v61 = vpack.c.bf16 %v1665_v60, %v1662_v57 }
 0x15c   :  { %v1666_v62 = vpop.f32.mrb[24].mxu0  ;;  %1775 = vmatmul.mubr.bf16.gmra.mrb[24].mxu1 %v721_v61 }
 0x15d   :  { %v1667_v0 = vpop.f32.mrb[25].mxu0 }
 0x15e   :  { %v1668_v1 = vadd.f32 %v1667_v0, %v1666_v62  ;;  %v1669_v2 = vpop.f32.mrb[26].mxu0 }
 0x15f   :  { %v1670_v4 = vpop.f32.mrb[27].mxu0 }
 0x160   :  { %v1671_v6 = vadd.f32 %v1670_v4, %v1669_v2 }
 0x162   :  { %v722_v7 = vpack.c.bf16 %v1671_v6, %v1668_v1 }
 0x164   :  { %v1672_v8 = vpop.f32.mrb[28].mxu0  ;;  %1778 = vmatprep.mubr.bf16.mxu1 %v722_v7 }
 0x165   :  { %v1673_v9 = vpop.f32.mrb[29].mxu0 }
 0x166   :  { %v1674_v10 = vadd.f32 %v1673_v9, %v1672_v8  ;;  %v1675_v11 = vpop.f32.mrb[30].mxu0 }
 0x167   :  { %v1676_v12 = vpop.f32.mrb[31].mxu0 }
 0x168   :  { %v1677_v14 = vadd.f32 %v1676_v12, %v1675_v11 }
 0x16a   :  { %v723_v15 = vpack.c.bf16 %v1677_v14, %v1674_v10 }
 0x16c   :  { %v1678_v16 = vpop.f32.mrb[32].mxu0  ;;  %1779 = vmatmul.mubr.bf16.gmra.mrb[28].mxu1 %v723_v15 }
 0x16d   :  { %v1679_v18 = vpop.f32.mrb[33].mxu0 }
 0x16e   :  { %v1680_v20 = vadd.f32 %v1679_v18, %v1678_v16  ;;  %v1681_v21 = vpop.f32.mrb[34].mxu0 }
 0x16f   :  { %v1682_v22 = vpop.f32.mrb[35].mxu0 }
 0x170   :  { %v1683_v23 = vadd.f32 %v1682_v22, %v1681_v21 }
 0x172   :  { %v724_v24 = vpack.c.bf16 %v1683_v23, %v1680_v20 }
 0x174   :  { %v1684_v25 = vpop.f32.mrb[36].mxu0  ;;  %1782 = vmatprep.mubr.bf16.mxu1 %v724_v24 }
 0x175   :  { %v1685_v26 = vpop.f32.mrb[37].mxu0 }
 0x176   :  { %v1686_v28 = vadd.f32 %v1685_v26, %v1684_v25  ;;  %v1687_v29 = vpop.f32.mrb[38].mxu0 }
 0x177   :  { %v1688_v30 = vpop.f32.mrb[39].mxu0 }
 0x178   :  { %v1689_v32 = vadd.f32 %v1688_v30, %v1687_v29 }
 0x17a   :  { %v725_v34 = vpack.c.bf16 %v1689_v32, %v1686_v28 }
 0x17c   :  { %v1690_v35 = vpop.f32.mrb[40].mxu0  ;;  %1783 = vmatmul.mubr.bf16.gmra.mrb[32].mxu1 %v725_v34 }
 0x17d   :  { %v1691_v36 = vpop.f32.mrb[41].mxu0 }
 0x17e   :  { %v1692_v37 = vadd.f32 %v1691_v36, %v1690_v35  ;;  %v1693_v38 = vpop.f32.mrb[42].mxu0 }
 0x17f   :  { %v1694_v39 = vpop.f32.mrb[43].mxu0 }
 0x180   :  { %v1695_v40 = vadd.f32 %v1694_v39, %v1693_v38 }
 0x182   :  { %v726_v42 = vpack.c.bf16 %v1695_v40, %v1692_v37 }
 0x184   :  { %v1696_v43 = vpop.f32.mrb[44].mxu0  ;;  %1786 = vmatprep.mubr.bf16.mxu1 %v726_v42 }
 0x185   :  { %v1697_v44 = vpop.f32.mrb[45].mxu0 }
 0x186   :  { %v1698_v46 = vadd.f32 %v1697_v44, %v1696_v43  ;;  %v1699_v48 = vpop.f32.mrb[46].mxu0 }
 0x187   :  { %v1700_v49 = vpop.f32.mrb[47].mxu0 }
 0x188   :  { %v1701_v50 = vadd.f32 %v1700_v49, %v1699_v48 }
 0x18a   :  { %v727_v51 = vpack.c.bf16 %v1701_v50, %v1698_v46 }
 0x18c   :  { %1787 = vmatmul.mubr.bf16.gmra.mrb[36].mxu1 %v727_v51 }
 0x18d   :  { %1790 = vmatprep.mubr.bf16.mxu1 %v728_v5 }
 0x194   :  { %1791 = vmatmul.mubr.bf16.gmra.mrb[40].mxu1 %v729_v19 }
 0x195   :  { %1794 = vmatprep.mubr.bf16.mxu1 %v730_v33 }
 0x19c   :  { %1795 = vmatmul.mubr.bf16.gmra.mrb[44].mxu1 %v731_v47 }
 0x20f   :  { %v1768_v53 = vpop.f32.mrb[16].mxu1 }
 0x210   :  { %v837_v63 = vpop.f32.mrb[17].mxu1  ;;  %v846_v13 = vadd.f32 %v1768_v53, %v2133_v52 }
 0x211   :  { %v838_v3 = vadd.f32 %v2133_v52, %v837_v63  ;;  %v1769_v5 = vpop.f32.mrb[18].mxu1 }
 0x212   :  { %v849_v17 = vadd.f32 %v1769_v5, %v2133_v52  ;;  %v840_v19 = vpop.f32.mrb[19].mxu1 }
 0x213   :  { %v841_v27 = vadd.f32 %v2133_v52, %v840_v19  ;;  %v1292_v33 = vmul.f32 %v838_v3, %v838_v3 }
 0x214   :  { %v1527_v31 = vpack.c.bf16 %v849_v17, %v846_v13 }
 0x215   :  { %v1522_v41 = vpack.c.bf16 %v841_v27, %v838_v3  ;;  %v1255_v45 = vadd.f32 %v841_v27, %v838_v3  ;;  %v1293_v47 = vmul.f32 %v841_v27, %v841_v27 }
 0x216   :  { %1599 = vst [vmem:[#allocation9 + $0x8] sm:$0xff] %v1527_v31  }
 0x217   :  { %1523 = vst [vmem:[#allocation9] sm:$0xff] %v1522_v41   ;;  %v1286_v54 = vrot.slane %v1255_v45, 4  ;;  %v1324_v55 = vadd.f32 %v1293_v47, %v1292_v33 }
 0x219   :  { %v1287_v56 = vadd.f32 %v1286_v54, %v1255_v45  ;;  %v1355_v57 = vrot.slane %v1324_v55, 4 }
 0x21b   :  { %v1288_v58 = vrot.slane %v1287_v56, 2  ;;  %v1356_v59 = vadd.f32 %v1355_v57, %v1324_v55 }
 0x21d   :  { %v1289_v60 = vadd.f32 %v1288_v58, %v1287_v56  ;;  %v1357_v61 = vrot.slane %v1356_v59, 2 }
 0x21f   :  { %v1772_v62 = vpop.f32.mrb[20].mxu1  ;;  %v1290_v0 = vrot.slane %v1289_v60, 1  ;;  %v1358_v1 = vadd.f32 %v1357_v61, %v1356_v59 }
 0x220   :  { %v853_v2 = vpop.f32.mrb[21].mxu1  ;;  %v862_v7 = vadd.f32 %v1772_v62, %v2133_v52 }
 0x221   :  { %v1773_v4 = vpop.f32.mrb[22].mxu1  ;;  %v1359_v6 = vrot.slane %v1358_v1, 1  ;;  %v854_v10 = vadd.f32 %v2133_v52, %v853_v2  ;;  %v1291_v12 = vadd.f32 %v1290_v0, %v1289_v60 }
 0x222   :  { %v865_v8 = vadd.f32 %v1773_v4, %v2133_v52  ;;  %v856_v9 = vpop.f32.mrb[23].mxu1 }
 0x223   :  { %v857_v11 = vadd.f32 %v2133_v52, %v856_v9  ;;  %v1360_v14 = vadd.f32 %v1359_v6, %v1358_v1 }
 0x224   :  { %v1537_v15 = vpack.c.bf16 %v865_v8, %v862_v7 }
 0x225   :  { %v1532_v16 = vpack.c.bf16 %v857_v11, %v854_v10  ;;  %v1362_v18 = vsel %vm1361_vm0, %v1291_v12, %v1360_v14 }
 0x226   :  { %1601 = vst [vmem:[#allocation9 + $0x18] sm:$0xff] %v1537_v15   ;;  %1363 = vst [vmem:[#allocation10] sm:$0x3] %v1362_v18 }
 0x227   :  { %1600 = vst [vmem:[#allocation9 + $0x10] sm:$0xff] %v1532_v16  }
 0x228   :  { %1972 = shalt.err (!%p1969_p0)
}
 0x229   :  { %s1973_s13 = scalar_lea.hbm %s2199_s5, 32 }
 0x22a   :  { %p1974_p1 = scmp.ne.s32.totalorder %s2199_s5, %s1973_s13  ;;  %p1977_p2 = scmp.lt.u32.totalorder %s1973_s13, %s2199_s5 }
 0x22c   :  { %p1979_p3 = pnand %p1977_p2, %p1974_p1 }
 0x22e   :  { %1982 = shalt.err (!%p1979_p3)
}
 0x22f   :  { %1385 = dma.vmem_to_hbm [thread:$0]  %s1383_s9, 32, %s2199_s5, [#allocation11]   ;;  %v1776_v20 = vpop.f32.mrb[24].mxu1 }
 0x230   :  { %v869_v21 = vpop.f32.mrb[25].mxu1  ;;  %v878_v23 = vadd.f32 %v1776_v20, %v2133_v52  ;;  %s2021_s5 = smov [#allocation9]  }
 0x231   :  { %v1777_v22 = vpop.f32.mrb[26].mxu1  ;;  %v870_v26 = vadd.f32 %v2133_v52, %v869_v21  ;;  %s1369_s19 = sshll.u32 %s2021_s5, 4  ;;  %s1370_s19 = int_to_ptr.vmem [resolvable:$true] %s1369_s19 }
 0x232   :  { %v881_v24 = vadd.f32 %v1777_v22, %v2133_v52  ;;  %v872_v25 = vpop.f32.mrb[27].mxu1  ;;  %s1983_s20 = scalar_lea.vmem %s1370_s19, 2048  ;;  %p1988_p5 = scmp.lt.s32.totalorder %s1370_s19, %s1370_s19 }
 0x233   :  { %v873_v28 = vadd.f32 %v2133_v52, %v872_v25  ;;  %p1984_p4 = scmp.ne.s32.totalorder %s1370_s19, %s1983_s20  ;;  %p1989_p6 = scmp.lt.s32.totalorder %s1983_s20, %s1983_s20 }
 0x234   :  { %v1547_v29 = vpack.c.bf16 %v881_v24, %v878_v23 }
 0x235   :  { %v1542_v30 = vpack.c.bf16 %v873_v28, %v870_v26  ;;  %p1990_p7 = por %p1989_p6, %p1988_p5 }
 0x236   :  { %1603 = vst [vmem:[#allocation9 + $0x28] sm:$0xff] %v1547_v29  }
 0x237   :  { %1602 = vst [vmem:[#allocation9 + $0x20] sm:$0xff] %v1542_v30   ;;  %p1991_p8 = pnand %p1990_p7, %p1984_p4 }
 0x23f   :  { %v1780_v32 = vpop.f32.mrb[28].mxu1 }
 0x240   :  { %v885_v34 = vpop.f32.mrb[29].mxu1  ;;  %v894_v36 = vadd.f32 %v1780_v32, %v2133_v52 }
 0x241   :  { %v1781_v35 = vpop.f32.mrb[30].mxu1  ;;  %v886_v39 = vadd.f32 %v2133_v52, %v885_v34 }
 0x242   :  { %v897_v37 = vadd.f32 %v1781_v35, %v2133_v52  ;;  %v888_v38 = vpop.f32.mrb[31].mxu1 }
 0x243   :  { %v889_v40 = vadd.f32 %v2133_v52, %v888_v38 }
 0x244   :  { %v1557_v42 = vpack.c.bf16 %v897_v37, %v894_v36 }
 0x245   :  { %v1552_v43 = vpack.c.bf16 %v889_v40, %v886_v39 }
 0x246   :  { %1605 = vst [vmem:[#allocation9 + $0x38] sm:$0xff] %v1557_v42  }
 0x247   :  { %1604 = vst [vmem:[#allocation9 + $0x30] sm:$0xff] %v1552_v43  }
 0x24f   :  { %v1784_v44 = vpop.f32.mrb[32].mxu1 }
 0x250   :  { %v901_v46 = vpop.f32.mrb[33].mxu1  ;;  %v910_v49 = vadd.f32 %v1784_v44, %v2133_v52 }
 0x251   :  { %v1785_v48 = vpop.f32.mrb[34].mxu1  ;;  %v902_v53 = vadd.f32 %v2133_v52, %v901_v46 }
 0x252   :  { %v913_v50 = vadd.f32 %v1785_v48, %v2133_v52  ;;  %v904_v51 = vpop.f32.mrb[35].mxu1 }
 0x253   :  { %v905_v63 = vadd.f32 %v2133_v52, %v904_v51 }
 0x254   :  { %v1567_v3 = vpack.c.bf16 %v913_v50, %v910_v49 }
 0x255   :  { %v1562_v5 = vpack.c.bf16 %v905_v63, %v902_v53 }
 0x256   :  { %1607 = vst [vmem:[#allocation9 + $0x48] sm:$0xff] %v1567_v3  }
 0x257   :  { %1606 = vst [vmem:[#allocation9 + $0x40] sm:$0xff] %v1562_v5  }
 0x25f   :  { %v1788_v13 = vpop.f32.mrb[36].mxu1 }
 0x260   :  { %v917_v17 = vpop.f32.mrb[37].mxu1  ;;  %v926_v27 = vadd.f32 %v1788_v13, %v2133_v52 }
 0x261   :  { %v1789_v19 = vpop.f32.mrb[38].mxu1  ;;  %v918_v41 = vadd.f32 %v2133_v52, %v917_v17 }
 0x262   :  { %v929_v31 = vadd.f32 %v1789_v19, %v2133_v52  ;;  %v920_v33 = vpop.f32.mrb[39].mxu1 }
 0x263   :  { %v921_v45 = vadd.f32 %v2133_v52, %v920_v33 }
 0x264   :  { %v1577_v47 = vpack.c.bf16 %v929_v31, %v926_v27 }
 0x265   :  { %v1572_v54 = vpack.c.bf16 %v921_v45, %v918_v41 }
 0x266   :  { %1609 = vst [vmem:[#allocation9 + $0x58] sm:$0xff] %v1577_v47  }
 0x267   :  { %1608 = vst [vmem:[#allocation9 + $0x50] sm:$0xff] %v1572_v54   ;;  %v1792_v55 = vpop.f32.mrb[40].mxu1 }
 0x268   :  { %v933_v56 = vpop.f32.mrb[41].mxu1  ;;  %v942_v58 = vadd.f32 %v1792_v55, %v2133_v52 }
 0x269   :  { %v1793_v57 = vpop.f32.mrb[42].mxu1  ;;  %v934_v61 = vadd.f32 %v2133_v52, %v933_v56 }
 0x26a   :  { %v945_v59 = vadd.f32 %v1793_v57, %v2133_v52  ;;  %v936_v60 = vpop.f32.mrb[43].mxu1 }
 0x26b   :  { %v937_v62 = vadd.f32 %v2133_v52, %v936_v60 }
 0x26c   :  { %v1587_v0 = vpack.c.bf16 %v945_v59, %v942_v58 }
 0x26d   :  { %v1582_v1 = vpack.c.bf16 %v937_v62, %v934_v61 }
 0x26e   :  { %1611 = vst [vmem:[#allocation9 + $0x68] sm:$0xff] %v1587_v0  }
 0x26f   :  { %1610 = vst [vmem:[#allocation9 + $0x60] sm:$0xff] %v1582_v1   ;;  %v1796_v2 = vpop.f32.mrb[44].mxu1 }
 0x270   :  { %v949_v4 = vpop.f32.mrb[45].mxu1  ;;  %v958_v7 = vadd.f32 %v1796_v2, %v2133_v52 }
 0x271   :  { %v1797_v6 = vpop.f32.mrb[46].mxu1  ;;  %v950_v10 = vadd.f32 %v2133_v52, %v949_v4 }
 0x272   :  { %v961_v8 = vadd.f32 %v1797_v6, %v2133_v52  ;;  %v952_v9 = vpop.f32.mrb[47].mxu1 }
 0x273   :  { %v953_v11 = vadd.f32 %v2133_v52, %v952_v9 }
 0x274   :  { %v1597_v12 = vpack.c.bf16 %v961_v8, %v958_v7 }
 0x275   :  { %v1592_v14 = vpack.c.bf16 %v953_v11, %v950_v10 }
 0x276   :  { %1613 = vst [vmem:[#allocation9 + $0x78] sm:$0xff] %v1597_v12  }
 0x277   :  { %1612 = vst [vmem:[#allocation9 + $0x70] sm:$0xff] %v1592_v14  }
 0x278   :  { %1994 = shalt.err (!%p1991_p8)
}
 0x279   :  { %s1995_s23 = scalar_lea.hbm %s2198_s4, 2048 }
 0x27a   :  { %p1996_p9 = scmp.ne.s32.totalorder %s2198_s4, %s1995_s23  ;;  %p1999_p10 = scmp.lt.u32.totalorder %s1995_s23, %s2198_s4 }
 0x27c   :  { %p2001_p11 = pnand %p1999_p10, %p1996_p9 }
 0x27e   :  { %2004 = shalt.err (!%p2001_p11)
}
 0x27f   :  { %1375 = dma.vmem_to_hbm [thread:$0]  %s1370_s19, 2048, %s2198_s4, [#allocation5], %s2014_s28, %s2014_s28, %s2015_s29  }
 0x280   :  { %2009 = dma.done.wait [#allocation5], 2048  }
 0x281   :  { %2010 = vsyncadd [#allocation5], 4294965248 }
 0x282   :  { %2011 = dma.done.wait [#allocation11], 32  }
 0x283   :  { %2012 = vsyncadd [#allocation11], 4294967264 }
 0x284   :  { %1392 = vsyncpa [#allocation4], 1 }
 0x285   :  { %1393 = vsyncpa [#allocation7], 1 }
 0x286   :  { %1394 = vsyncpa [#allocation5], 1 }
 0x287   :  { %1395 = vsyncpa [#allocation11], 1 }

</bundles_post_ra>
